<compile_context>
chip_gen: v7x
topology: tpu7x:2x2x1
jax: 0.10.0
libtpu: 0.0.40
codegen_flags: <defaults>
</compile_context>

<pallas_src>
import functools

import jax
import jax.numpy as jnp
from jax import lax
from jax.experimental import pallas as pl
from jax.experimental.pallas import tpu as pltpu

LN_EPS = 1e-5  # torch.nn.LayerNorm default


def _fr_proj_kernel(x_ref, w_ref, b_ref, g_ref, beta_ref, o_ref, *,
                    group, cross_dim):
    # x_ref:    [B, E]    bf16 embeds (same block for every grid step)
    # w_ref:    [E, G*D]  bf16 weight slab for this token group
    # b_ref:    [1, G*D]  f32 bias slab
    # g_ref:    [1, D]    f32 LayerNorm gamma
    # beta_ref: [1, D]    f32 LayerNorm beta
    # o_ref:    [B, G*D]  output slab for this token group
    D = cross_dim
    x = x_ref[...]
    gamma = g_ref[...]
    beta = beta_ref[...]
    inv_d = jnp.float32(1.0 / D)

    # `group` is small (a handful of tokens), so a static loop with static,
    # lane-aligned slices is used: the per-token matmul plus fused one-pass LN
    # reductions keep every f32 intermediate at [B, D], so nothing [B, G*D]-
    # sized stays live, and no dynamic lane-offset slicing is needed.
    for g in range(group):
        sl = slice(g * D, (g + 1) * D)
        yg = jnp.dot(x, w_ref[:, sl], preferred_element_type=jnp.float32)
        yg = yg + b_ref[:, sl]                         # [1, D] broadcast over B
        s = jnp.sum(yg, axis=-1, keepdims=True)        # fused LN statistics:
        ss = jnp.sum(yg * yg, axis=-1, keepdims=True)  # one pass, two sums
        mean = s * inv_d
        var = jnp.maximum(ss * inv_d - mean * mean, 0.0)
        y_norm = (yg - mean) * lax.rsqrt(var + LN_EPS)
        o_ref[:, sl] = (y_norm * gamma + beta).astype(o_ref.dtype)


def _round8(n):
    return ((n + 7) // 8) * 8


def _chip_config():
    """Best-effort chip caps: (physical VMEM bytes per core, TensorCores/chip)."""
    kind = ""
    try:
        kind = jax.devices()[0].device_kind.lower()
    except Exception:  # pragma: no cover - defensive
        pass
    if "v7" in kind:
        return 64 << 20, 2          # v7x: 64 MiB VMEM per TC, 2 TCs/chip
    if "v4" in kind:
        return 128 << 20, 2         # v4 megacore
    # v5e / v6e / unknown: single TensorCore, 128 MiB physical VMEM
    return 128 << 20, 1


def _vmem_bytes(B, E, D, group, param_itemsize, out_itemsize):
    """Complete per-kernel VMEM footprint for a given tokens-per-step."""
    GD = group * D
    Bp = _round8(B)
    w_bufs = 2 * E * GD * param_itemsize    # double-buffered weight stream
    o_bufs = 2 * Bp * GD * out_itemsize     # double-buffered output blocks
    x_buf = 2 * Bp * E * param_itemsize     # bf16 embeds block
    b_buf = 2 * 8 * GD * 4                  # f32 bias slab (sublane-padded)
    ln_buf = 2 * 2 * 8 * D * 4              # f32 gamma + beta
    return w_bufs + o_bufs + x_buf + b_buf + ln_buf


def _pick_group(T, B, E, D, param_itemsize, out_itemsize, *, num_tc, vmem_cap):
    """Largest tokens-per-step whose full buffer set fits `vmem_cap`.
    Only on multi-TC chips do we force >= 2 (ideally an even number of) grid
    steps so megacore sharding stays load-balanced; single-TC chips get the
    biggest possible contiguous weight DMA."""
    divisors = [g for g in range(1, T + 1) if T % g == 0]
    feasible = [g for g in divisors
                if _vmem_bytes(B, E, D, g, param_itemsize, out_itemsize) <= vmem_cap]
    if not feasible:
        return 1
    g = max(feasible)
    if num_tc >= 2 and T >= 2:
        g = min(g, T // 2)                          # give every core work
        even = [c for c in feasible if c <= g and (T // c) % 2 == 0]
        if even:
            g = max(even)                           # even step count per core
        while T % g:
            g -= 1
    return max(1, g)


def fr_image_proj(fr_embeds, w_t, bias, gamma, beta, *, num_tokens, cross_dim,
                  group=None, param_dtype=jnp.bfloat16, out_dtype=None):
    """fr_embeds: [B, E]; w_t: [E, T*D] (transposed Linear weight);
    bias: [T*D]; gamma/beta: [D]. Returns [B, T, D]."""
    B, E = fr_embeds.shape
    T, D = num_tokens, cross_dim
    assert w_t.shape == (E, T * D), (w_t.shape, (E, T * D))
    assert bias.shape == (T * D,)
    assert gamma.shape == (D,) and beta.shape == (D,)
    assert D % 128 == 0, "cross_attention_dim must be a multiple of 128 (lanes)"
    # E % 16 avoids padded sublanes for bf16 weight packing; % 8 is the hard rule.
    assert E % 8 == 0, "fr_embeddings_dim must be a multiple of 8 (sublanes)"

    if out_dtype is None:
        out_dtype = fr_embeds.dtype
    p_isz = jnp.dtype(param_dtype).itemsize
    o_isz = jnp.dtype(out_dtype).itemsize

    physical_vmem, num_tc = _chip_config()
    vmem_cap = physical_vmem // 2                   # conservative working budget
    if group is None:
        group = _pick_group(T, B, E, D, p_isz, o_isz,
                            num_tc=num_tc, vmem_cap=vmem_cap)
    assert T % group == 0, (T, group)
    GD = group * D
    grid_t = T // group

    budget = _vmem_bytes(B, E, D, group, p_isz, o_isz)
    assert budget <= vmem_cap, (
        f"VMEM budget {budget >> 20} MiB exceeds cap {vmem_cap >> 20} MiB; "
        "reduce `group`")
    # Explicit scoped-VMEM limit: the full buffer budget plus headroom for
    # compiler internal scratch / spills, well under physical per-core VMEM.
    vmem_limit = int(min(physical_vmem - (8 << 20),
                         max(budget + (8 << 20), 32 << 20)))

    # Stream only the big weight in the narrow dtype; bias/gamma/beta are tiny
    # so they stay in f32 (exact parity with the PyTorch parameters); x is
    # cast to the matmul dtype once here instead of per grid step.
    x_p = fr_embeds.astype(param_dtype)
    w_p = w_t.astype(param_dtype)
    b_p = bias.reshape(1, T * D).astype(jnp.float32)
    g_p = gamma.reshape(1, D).astype(jnp.float32)
    beta_p = beta.reshape(1, D).astype(jnp.float32)

    out_flat = pl.pallas_call(
        functools.partial(_fr_proj_kernel, group=group, cross_dim=D),
        out_shape=jax.ShapeDtypeStruct((B, T * D), out_dtype),
        grid=(grid_t,),
        in_specs=[
            pl.BlockSpec((B, E), lambda t: (0, 0)),    # x (constant block)
            pl.BlockSpec((E, GD), lambda t: (0, t)),   # weight slab (2-buffered)
            pl.BlockSpec((1, GD), lambda t: (0, t)),   # bias slab
            pl.BlockSpec((1, D), lambda t: (0, 0)),    # gamma
            pl.BlockSpec((1, D), lambda t: (0, 0)),    # beta
        ],
        out_specs=pl.BlockSpec((B, GD), lambda t: (0, t)),
        compiler_params=pltpu.CompilerParams(
            dimension_semantics=("parallel",),
            vmem_limit_bytes=vmem_limit),
    )(x_p, w_p, b_p, g_p, beta_p)

    return out_flat.reshape(B, T, D)


def _reference(fr_embeds, w_t, bias, gamma, beta, num_tokens, cross_dim,
               matmul_dtype):
    """Pure-JAX reference with the same dtype flow as the kernel
    (matmul operands in `matmul_dtype`, f32 accumulate, f32 bias/LN params)."""
    B = fr_embeds.shape[0]
    x = fr_embeds.astype(matmul_dtype)
    w = w_t.astype(matmul_dtype)
    y = jnp.dot(x, w, preferred_element_type=jnp.float32)
    y = y + bias.astype(jnp.float32)
    y = y.reshape(B, num_tokens, cross_dim)
    mean = jnp.mean(y, axis=-1, keepdims=True)
    var = jnp.mean((y - mean) ** 2, axis=-1, keepdims=True)
    out = ((y - mean) * lax.rsqrt(var + LN_EPS) * gamma.astype(jnp.float32)
           + beta.astype(jnp.float32))
    return out.astype(fr_embeds.dtype)


if __name__ == "__main__":
    # Small shapes consistent with the module (scaled-down defaults). Batch is
    # amortized over several samples so the (dominant) weight stream is reused.
    B = 8                      # batch
    E = 128                    # fr_embeddings_dim (512 in the original)
    D = 256                    # cross_attention_dim (1024 in the original)
    T = 4                      # fr_extra_context_tokens

    key = jax.random.PRNGKey(0)
    k_x, k_w, k_b, k_g, k_beta = jax.random.split(key, 5)

    fr_embeds = jax.random.normal(k_x, (B, E), dtype=jnp.float32)
    # PyTorch stores the Linear weight as [T*D, E]; we generate directly in the
    # transposed [E, T*D] layout consumed by the kernel.
    w_t = jax.random.normal(k_w, (E, T * D), dtype=jnp.float32) * 0.02
    bias = jax.random.normal(k_b, (T * D,), dtype=jnp.float32) * 0.01
    gamma = 1.0 + 0.1 * jax.random.normal(k_g, (D,), dtype=jnp.float32)
    beta = 0.1 * jax.random.normal(k_beta, (D,), dtype=jnp.float32)

    out = fr_image_proj(fr_embeds, w_t, bias, gamma, beta,
                        num_tokens=T, cross_dim=D)
    out = jax.block_until_ready(out)
    assert out.shape == (B, T, D)

    # Exact-dtype-flow reference (bf16 matmul operands, f32 accumulate / LN).
    ref_bf16 = _reference(fr_embeds, w_t, bias, gamma, beta, T, D,
                          matmul_dtype=jnp.bfloat16)
    assert jnp.allclose(out, ref_bf16, atol=2e-3, rtol=2e-3), (
        float(jnp.max(jnp.abs(out - ref_bf16))))

    # Semantic sanity check against the full-f32 PyTorch-equivalent math.
    ref_f32 = _reference(fr_embeds, w_t, bias, gamma, beta, T, D,
                         matmul_dtype=jnp.float32)
    assert jnp.allclose(out, ref_f32, atol=1e-1, rtol=1e-1), (
        float(jnp.max(jnp.abs(out - ref_f32))))

    print("KERNEL_OK")
</pallas_src>

<mosaic_0001>
module attributes {stable_mosaic.version = 11 : i64} {
  func.func @_fr_proj_kernel(%arg0: i32, %arg1: memref<8x128xbf16, #tpu.memory_space<vmem>>, %arg2: memref<128x1024xbf16, #tpu.memory_space<vmem>>, %arg3: memref<1x1024xf32, #tpu.memory_space<vmem>>, %arg4: memref<1x256xf32, #tpu.memory_space<vmem>>, %arg5: memref<1x256xf32, #tpu.memory_space<vmem>>, %arg6: memref<8x1024xf32, #tpu.memory_space<vmem>>) attributes {dimension_semantics = [#tpu.dimension_semantics<parallel>], iteration_bounds = array<i64: 1>, scalar_prefetch = 0 : i64, scratch_operands = 0 : i64, tpu.core_type = #tpu.core_type<tc>, window_params = [{pipeline_mode = #tpu.pipeline_mode<synchronous>, transform_indices = @transform_0, window_bounds = array<i64: 8, 128>}, {transform_indices = @transform_1, window_bounds = array<i64: 128, 1024>}, {transform_indices = @transform_2, window_bounds = array<i64: 1, 1024>}, {pipeline_mode = #tpu.pipeline_mode<synchronous>, transform_indices = @transform_3, window_bounds = array<i64: 1, 256>}, {pipeline_mode = #tpu.pipeline_mode<synchronous>, transform_indices = @transform_4, window_bounds = array<i64: 1, 256>}, {transform_indices = @transform_5, window_bounds = array<i64: 8, 1024>}]} {
    %c0 = arith.constant 0 : index
    %c0_0 = arith.constant 0 : index
    %0 = vector.load %arg1[%c0, %c0_0] : memref<8x128xbf16, #tpu.memory_space<vmem>>, vector<8x128xbf16>
    %c0_1 = arith.constant 0 : index
    %c0_2 = arith.constant 0 : index
    %1 = vector.load %arg4[%c0_1, %c0_2] : memref<1x256xf32, #tpu.memory_space<vmem>>, vector<1x256xf32>
    %c0_3 = arith.constant 0 : index
    %c0_4 = arith.constant 0 : index
    %2 = vector.load %arg5[%c0_3, %c0_4] : memref<1x256xf32, #tpu.memory_space<vmem>>, vector<1x256xf32>
    %c0_5 = arith.constant 0 : index
    %c0_6 = arith.constant 0 : index
    %3 = vector.load %arg2[%c0_5, %c0_6] : memref<128x1024xbf16, #tpu.memory_space<vmem>>, vector<128x256xbf16>
    %cst = arith.constant dense<0.000000e+00> : vector<8x256xf32>
    %4 = tpu.matmul %0, %3, %cst {dimension_numbers = #tpu.dot_dimension_numbers<[1], [0], [0], [1], [0, 0, 1, 1], [], []>} : vector<8x128xbf16>, vector<128x256xbf16>, vector<8x256xf32> -> vector<8x256xf32>
    %c0_7 = arith.constant 0 : index
    %c0_8 = arith.constant 0 : index
    %5 = vector.load %arg3[%c0_7, %c0_8] : memref<1x1024xf32, #tpu.memory_space<vmem>>, vector<1x256xf32>
    %6 = vector.broadcast %5 : vector<1x256xf32> to vector<8x256xf32>
    %7 = arith.addf %4, %6 : vector<8x256xf32>
    %cst_9 = arith.constant dense<0.000000e+00> : vector<8xf32>
    %8 = vector.multi_reduction <add>, %7, %cst_9 [1] : vector<8x256xf32> to vector<8xf32>
    %9 = vector.shape_cast %8 : vector<8xf32> to vector<8x1xf32>
    %10 = arith.mulf %7, %7 : vector<8x256xf32>
    %cst_10 = arith.constant dense<0.000000e+00> : vector<8xf32>
    %11 = vector.multi_reduction <add>, %10, %cst_10 [1] : vector<8x256xf32> to vector<8xf32>
    %12 = vector.shape_cast %11 : vector<8xf32> to vector<8x1xf32>
    %cst_11 = arith.constant 3.906250e-03 : f32
    %13 = vector.broadcast %cst_11 : f32 to vector<8x1xf32>
    %14 = arith.mulf %9, %13 : vector<8x1xf32>
    %cst_12 = arith.constant 3.906250e-03 : f32
    %15 = vector.broadcast %cst_12 : f32 to vector<8x1xf32>
    %16 = arith.mulf %12, %15 : vector<8x1xf32>
    %17 = arith.mulf %14, %14 : vector<8x1xf32>
    %18 = arith.subf %16, %17 : vector<8x1xf32>
    %cst_13 = arith.constant 0.000000e+00 : f32
    %19 = vector.broadcast %cst_13 : f32 to vector<8x1xf32>
    %20 = arith.maximumf %18, %19 : vector<8x1xf32>
    %21 = vector.broadcast %14 : vector<8x1xf32> to vector<8x256xf32>
    %22 = arith.subf %7, %21 : vector<8x256xf32>
    %cst_14 = arith.constant 9.99999974E-6 : f32
    %23 = vector.broadcast %cst_14 : f32 to vector<8x1xf32>
    %24 = arith.addf %20, %23 : vector<8x1xf32>
    %25 = math.rsqrt %24 : vector<8x1xf32>
    %26 = vector.broadcast %25 : vector<8x1xf32> to vector<8x256xf32>
    %27 = arith.mulf %22, %26 : vector<8x256xf32>
    %28 = vector.broadcast %1 : vector<1x256xf32> to vector<8x256xf32>
    %29 = arith.mulf %27, %28 : vector<8x256xf32>
    %30 = vector.broadcast %2 : vector<1x256xf32> to vector<8x256xf32>
    %31 = arith.addf %29, %30 : vector<8x256xf32>
    %c0_15 = arith.constant 0 : index
    %c0_16 = arith.constant 0 : index
    %32 = vector.load %arg6[%c0_15, %c0_16] : memref<8x1024xf32, #tpu.memory_space<vmem>>, vector<8x256xf32>
    tpu.vector_store %arg6[%c0_15, %c0_16], %31 {strides = array<i32>} : memref<8x1024xf32, #tpu.memory_space<vmem>>, vector<8x256xf32>,
    %c0_17 = arith.constant 0 : index
    %c256 = arith.constant 256 : index
    %33 = vector.load %arg2[%c0_17, %c256] : memref<128x1024xbf16, #tpu.memory_space<vmem>>, vector<128x256xbf16>
    %cst_18 = arith.constant dense<0.000000e+00> : vector<8x256xf32>
    %34 = tpu.matmul %0, %33, %cst_18 {dimension_numbers = #tpu.dot_dimension_numbers<[1], [0], [0], [1], [0, 0, 1, 1], [], []>} : vector<8x128xbf16>, vector<128x256xbf16>, vector<8x256xf32> -> vector<8x256xf32>
    %c0_19 = arith.constant 0 : index
    %c256_20 = arith.constant 256 : index
    %35 = vector.load %arg3[%c0_19, %c256_20] : memref<1x1024xf32, #tpu.memory_space<vmem>>, vector<1x256xf32>
    %36 = vector.broadcast %35 : vector<1x256xf32> to vector<8x256xf32>
    %37 = arith.addf %34, %36 : vector<8x256xf32>
    %cst_21 = arith.constant dense<0.000000e+00> : vector<8xf32>
    %38 = vector.multi_reduction <add>, %37, %cst_21 [1] : vector<8x256xf32> to vector<8xf32>
    %39 = vector.shape_cast %38 : vector<8xf32> to vector<8x1xf32>
    %40 = arith.mulf %37, %37 : vector<8x256xf32>
    %cst_22 = arith.constant dense<0.000000e+00> : vector<8xf32>
    %41 = vector.multi_reduction <add>, %40, %cst_22 [1] : vector<8x256xf32> to vector<8xf32>
    %42 = vector.shape_cast %41 : vector<8xf32> to vector<8x1xf32>
    %cst_23 = arith.constant 3.906250e-03 : f32
    %43 = vector.broadcast %cst_23 : f32 to vector<8x1xf32>
    %44 = arith.mulf %39, %43 : vector<8x1xf32>
    %cst_24 = arith.constant 3.906250e-03 : f32
    %45 = vector.broadcast %cst_24 : f32 to vector<8x1xf32>
    %46 = arith.mulf %42, %45 : vector<8x1xf32>
    %47 = arith.mulf %44, %44 : vector<8x1xf32>
    %48 = arith.subf %46, %47 : vector<8x1xf32>
    %cst_25 = arith.constant 0.000000e+00 : f32
    %49 = vector.broadcast %cst_25 : f32 to vector<8x1xf32>
    %50 = arith.maximumf %48, %49 : vector<8x1xf32>
    %51 = vector.broadcast %44 : vector<8x1xf32> to vector<8x256xf32>
    %52 = arith.subf %37, %51 : vector<8x256xf32>
    %cst_26 = arith.constant 9.99999974E-6 : f32
    %53 = vector.broadcast %cst_26 : f32 to vector<8x1xf32>
    %54 = arith.addf %50, %53 : vector<8x1xf32>
    %55 = math.rsqrt %54 : vector<8x1xf32>
    %56 = vector.broadcast %55 : vector<8x1xf32> to vector<8x256xf32>
    %57 = arith.mulf %52, %56 : vector<8x256xf32>
    %58 = vector.broadcast %1 : vector<1x256xf32> to vector<8x256xf32>
    %59 = arith.mulf %57, %58 : vector<8x256xf32>
    %60 = vector.broadcast %2 : vector<1x256xf32> to vector<8x256xf32>
    %61 = arith.addf %59, %60 : vector<8x256xf32>
    %c0_27 = arith.constant 0 : index
    %c256_28 = arith.constant 256 : index
    %62 = vector.load %arg6[%c0_27, %c256_28] : memref<8x1024xf32, #tpu.memory_space<vmem>>, vector<8x256xf32>
    tpu.vector_store %arg6[%c0_27, %c256_28], %61 {strides = array<i32>} : memref<8x1024xf32, #tpu.memory_space<vmem>>, vector<8x256xf32>,
    %c0_29 = arith.constant 0 : index
    %c512 = arith.constant 512 : index
    %63 = vector.load %arg2[%c0_29, %c512] : memref<128x1024xbf16, #tpu.memory_space<vmem>>, vector<128x256xbf16>
    %cst_30 = arith.constant dense<0.000000e+00> : vector<8x256xf32>
    %64 = tpu.matmul %0, %63, %cst_30 {dimension_numbers = #tpu.dot_dimension_numbers<[1], [0], [0], [1], [0, 0, 1, 1], [], []>} : vector<8x128xbf16>, vector<128x256xbf16>, vector<8x256xf32> -> vector<8x256xf32>
    %c0_31 = arith.constant 0 : index
    %c512_32 = arith.constant 512 : index
    %65 = vector.load %arg3[%c0_31, %c512_32] : memref<1x1024xf32, #tpu.memory_space<vmem>>, vector<1x256xf32>
    %66 = vector.broadcast %65 : vector<1x256xf32> to vector<8x256xf32>
    %67 = arith.addf %64, %66 : vector<8x256xf32>
    %cst_33 = arith.constant dense<0.000000e+00> : vector<8xf32>
    %68 = vector.multi_reduction <add>, %67, %cst_33 [1] : vector<8x256xf32> to vector<8xf32>
    %69 = vector.shape_cast %68 : vector<8xf32> to vector<8x1xf32>
    %70 = arith.mulf %67, %67 : vector<8x256xf32>
    %cst_34 = arith.constant dense<0.000000e+00> : vector<8xf32>
    %71 = vector.multi_reduction <add>, %70, %cst_34 [1] : vector<8x256xf32> to vector<8xf32>
    %72 = vector.shape_cast %71 : vector<8xf32> to vector<8x1xf32>
    %cst_35 = arith.constant 3.906250e-03 : f32
    %73 = vector.broadcast %cst_35 : f32 to vector<8x1xf32>
    %74 = arith.mulf %69, %73 : vector<8x1xf32>
    %cst_36 = arith.constant 3.906250e-03 : f32
    %75 = vector.broadcast %cst_36 : f32 to vector<8x1xf32>
    %76 = arith.mulf %72, %75 : vector<8x1xf32>
    %77 = arith.mulf %74, %74 : vector<8x1xf32>
    %78 = arith.subf %76, %77 : vector<8x1xf32>
    %cst_37 = arith.constant 0.000000e+00 : f32
    %79 = vector.broadcast %cst_37 : f32 to vector<8x1xf32>
    %80 = arith.maximumf %78, %79 : vector<8x1xf32>
    %81 = vector.broadcast %74 : vector<8x1xf32> to vector<8x256xf32>
    %82 = arith.subf %67, %81 : vector<8x256xf32>
    %cst_38 = arith.constant 9.99999974E-6 : f32
    %83 = vector.broadcast %cst_38 : f32 to vector<8x1xf32>
    %84 = arith.addf %80, %83 : vector<8x1xf32>
    %85 = math.rsqrt %84 : vector<8x1xf32>
    %86 = vector.broadcast %85 : vector<8x1xf32> to vector<8x256xf32>
    %87 = arith.mulf %82, %86 : vector<8x256xf32>
    %88 = vector.broadcast %1 : vector<1x256xf32> to vector<8x256xf32>
    %89 = arith.mulf %87, %88 : vector<8x256xf32>
    %90 = vector.broadcast %2 : vector<1x256xf32> to vector<8x256xf32>
    %91 = arith.addf %89, %90 : vector<8x256xf32>
    %c0_39 = arith.constant 0 : index
    %c512_40 = arith.constant 512 : index
    %92 = vector.load %arg6[%c0_39, %c512_40] : memref<8x1024xf32, #tpu.memory_space<vmem>>, vector<8x256xf32>
    tpu.vector_store %arg6[%c0_39, %c512_40], %91 {strides = array<i32>} : memref<8x1024xf32, #tpu.memory_space<vmem>>, vector<8x256xf32>,
    %c0_41 = arith.constant 0 : index
    %c768 = arith.constant 768 : index
    %93 = vector.load %arg2[%c0_41, %c768] : memref<128x1024xbf16, #tpu.memory_space<vmem>>, vector<128x256xbf16>
    %cst_42 = arith.constant dense<0.000000e+00> : vector<8x256xf32>
    %94 = tpu.matmul %0, %93, %cst_42 {dimension_numbers = #tpu.dot_dimension_numbers<[1], [0], [0], [1], [0, 0, 1, 1], [], []>} : vector<8x128xbf16>, vector<128x256xbf16>, vector<8x256xf32> -> vector<8x256xf32>
    %c0_43 = arith.constant 0 : index
    %c768_44 = arith.constant 768 : index
    %95 = vector.load %arg3[%c0_43, %c768_44] : memref<1x1024xf32, #tpu.memory_space<vmem>>, vector<1x256xf32>
    %96 = vector.broadcast %95 : vector<1x256xf32> to vector<8x256xf32>
    %97 = arith.addf %94, %96 : vector<8x256xf32>
    %cst_45 = arith.constant dense<0.000000e+00> : vector<8xf32>
    %98 = vector.multi_reduction <add>, %97, %cst_45 [1] : vector<8x256xf32> to vector<8xf32>
    %99 = vector.shape_cast %98 : vector<8xf32> to vector<8x1xf32>
    %100 = arith.mulf %97, %97 : vector<8x256xf32>
    %cst_46 = arith.constant dense<0.000000e+00> : vector<8xf32>
    %101 = vector.multi_reduction <add>, %100, %cst_46 [1] : vector<8x256xf32> to vector<8xf32>
    %102 = vector.shape_cast %101 : vector<8xf32> to vector<8x1xf32>
    %cst_47 = arith.constant 3.906250e-03 : f32
    %103 = vector.broadcast %cst_47 : f32 to vector<8x1xf32>
    %104 = arith.mulf %99, %103 : vector<8x1xf32>
    %cst_48 = arith.constant 3.906250e-03 : f32
    %105 = vector.broadcast %cst_48 : f32 to vector<8x1xf32>
    %106 = arith.mulf %102, %105 : vector<8x1xf32>
    %107 = arith.mulf %104, %104 : vector<8x1xf32>
    %108 = arith.subf %106, %107 : vector<8x1xf32>
    %cst_49 = arith.constant 0.000000e+00 : f32
    %109 = vector.broadcast %cst_49 : f32 to vector<8x1xf32>
    %110 = arith.maximumf %108, %109 : vector<8x1xf32>
    %111 = vector.broadcast %104 : vector<8x1xf32> to vector<8x256xf32>
    %112 = arith.subf %97, %111 : vector<8x256xf32>
    %cst_50 = arith.constant 9.99999974E-6 : f32
    %113 = vector.broadcast %cst_50 : f32 to vector<8x1xf32>
    %114 = arith.addf %110, %113 : vector<8x1xf32>
    %115 = math.rsqrt %114 : vector<8x1xf32>
    %116 = vector.broadcast %115 : vector<8x1xf32> to vector<8x256xf32>
    %117 = arith.mulf %112, %116 : vector<8x256xf32>
    %118 = vector.broadcast %1 : vector<1x256xf32> to vector<8x256xf32>
    %119 = arith.mulf %117, %118 : vector<8x256xf32>
    %120 = vector.broadcast %2 : vector<1x256xf32> to vector<8x256xf32>
    %121 = arith.addf %119, %120 : vector<8x256xf32>
    %c0_51 = arith.constant 0 : index
    %c768_52 = arith.constant 768 : index
    %122 = vector.load %arg6[%c0_51, %c768_52] : memref<8x1024xf32, #tpu.memory_space<vmem>>, vector<8x256xf32>
    tpu.vector_store %arg6[%c0_51, %c768_52], %121 {strides = array<i32>} : memref<8x1024xf32, #tpu.memory_space<vmem>>, vector<8x256xf32>,
    return
  }
  func.func @transform_0(%arg0: i32) -> (i32, i32) {
    %c0_i32 = arith.constant 0 : i32
    %c0_i32_0 = arith.constant 0 : i32
    %c0_i32_1 = arith.constant 0 : i32
    return %c0_i32, %c0_i32_0 : i32, i32
  }
  func.func @transform_1(%arg0: i32) -> (i32, i32) {
    %c0_i32 = arith.constant 0 : i32
    %c0_i32_0 = arith.constant 0 : i32
    return %c0_i32, %arg0 : i32, i32
  }
  func.func @transform_2(%arg0: i32) -> (i32, i32) {
    %c0_i32 = arith.constant 0 : i32
    %c0_i32_0 = arith.constant 0 : i32
    return %c0_i32, %arg0 : i32, i32
  }
  func.func @transform_3(%arg0: i32) -> (i32, i32) {
    %c0_i32 = arith.constant 0 : i32
    %c0_i32_0 = arith.constant 0 : i32
    %c0_i32_1 = arith.constant 0 : i32
    return %c0_i32, %c0_i32_0 : i32, i32
  }
  func.func @transform_4(%arg0: i32) -> (i32, i32) {
    %c0_i32 = arith.constant 0 : i32
    %c0_i32_0 = arith.constant 0 : i32
    %c0_i32_1 = arith.constant 0 : i32
    return %c0_i32, %c0_i32_0 : i32, i32
  }
  func.func @transform_5(%arg0: i32) -> (i32, i32) {
    %c0_i32 = arith.constant 0 : i32
    %c0_i32_0 = arith.constant 0 : i32
    return %c0_i32, %arg0 : i32, i32
  }
}

</mosaic_0001>

<bundles_post_ra>
// kernel: tpu_custom_call.1
= control target key start
LH: loop header
LB: loop body
LE: loop exit
PB: predicated region body
PF: predicated region fallthrough
CT: control target
= control target key end

     0   :  { %10 = vsyncpa [#allocation3], 0  ;;  %s1134_s0 = inlined_call_operand.hbm [shape: bf16[8,128], index: 0, kind: input, shape index: {}]   ;;  %s1135_s1 = inlined_call_operand.hbm [shape: bf16[128,1024], index: 1, kind: input, shape index: {}]   ;;  %s1136_s2 = inlined_call_operand.hbm [shape: f32[1,1024], index: 2, kind: input, shape index: {}]   ;;  %s1137_s3 = inlined_call_operand.vmem [shape: f32[1,256], index: 3, kind: input, shape index: {}]   ;;  %s1138_s4 = inlined_call_operand.vmem [shape: f32[1,256], index: 4, kind: input, shape index: {}]   ;;  %s1139_s5 = inlined_call_operand.hbm [shape: f32[8,1024], index: 5, kind: output, shape index: {}]  }
   0x1   :  { %11 = vsyncpa [#allocation6], 0 }
   0x2   :  { %12 = vsyncpa [#allocation4], 0  ;;  %s969_s18 = smov [#allocation5]   ;;  %s875_s22 = scalar_lea.hbm %s1135_s1, 8192 }
   0x3   :  { %s28_s19 = sshll.u32 %s969_s18, 4  ;;  %p876_p0 = scmp.ne.s32.totalorder %s1135_s1, %s875_s22  ;;  %s29_s19 = int_to_ptr.vmem [resolvable:$true] %s28_s19 }
   0x4   :  { %p879_p1 = scmp.lt.u32.totalorder %s875_s22, %s1135_s1 }
   0x6   :  { %p881_p2 = pnand %p879_p1, %p876_p0 }
   0x8   :  { %884 = shalt.err (!%p881_p2)
}
   0x9   :  { %s885_s27 = scalar_lea.vmem %s29_s19, 8192  ;;  %p890_p4 = scmp.lt.s32.totalorder %s29_s19, %s29_s19 }
   0xa   :  { %p886_p3 = scmp.ne.s32.totalorder %s29_s19, %s885_s27  ;;  %p891_p5 = scmp.lt.s32.totalorder %s885_s27, %s885_s27 }
   0xc   :  { %p892_p6 = por %p891_p5, %p890_p4 }
   0xe   :  { %p893_p7 = pnand %p892_p6, %p886_p3 }
  0x10   :  { %896 = shalt.err (!%p893_p7)
}
  0x11   :  { %s970_s28 = smov 512   ;;  %s971_s29 = smov 32  }
  0x12   :  { %34 = dma.hbm_to_vmem [thread:$0]  %s1135_s1, 8192, %s29_s19, [#allocation6], %s970_s28, %s970_s28, %s971_s29  }
  0x13   :  { %s972_s7 = smov [#allocation2]   ;;  %s973_s9 = smov [#allocation7]  }
  0x14   :  { %s19_s8 = sshll.u32 %s972_s7, 4  ;;  %s41_s10 = sshll.u32 %s973_s9, 4  ;;  %s20_s8 = int_to_ptr.vmem [resolvable:$true] %s19_s8  ;;  %s42_s10 = int_to_ptr.vmem [resolvable:$true] %s41_s10 }
  0x15   :  { %s897_s13 = scalar_lea.hbm %s1134_s0, 64 }
  0x16   :  { %p898_p8 = scmp.ne.s32.totalorder %s1134_s0, %s897_s13  ;;  %p901_p9 = scmp.lt.u32.totalorder %s897_s13, %s1134_s0 }
  0x18   :  { %p903_p10 = pnand %p901_p9, %p898_p8 }
  0x1a   :  { %906 = shalt.err (!%p903_p10)
}
  0x1b   :  { %s907_s1 = scalar_lea.vmem %s20_s8, 64  ;;  %p912_p12 = scmp.lt.s32.totalorder %s20_s8, %s20_s8 }
  0x1c   :  { %p908_p11 = scmp.ne.s32.totalorder %s20_s8, %s907_s1  ;;  %p913_p13 = scmp.lt.s32.totalorder %s907_s1, %s907_s1 }
  0x1e   :  { %p914_p0 = por %p913_p13, %p912_p12 }
  0x20   :  { %p915_p1 = pnand %p914_p0, %p908_p11 }
  0x22   :  { %918 = shalt.err (!%p915_p1)
}
  0x23   :  { %22 = dma.hbm_to_vmem [thread:$0]  %s1134_s0, 64, %s20_s8, [#allocation3]  }
  0x24   :  { %s919_s22 = scalar_lea.hbm %s1136_s2, 128 }
  0x25   :  { %p920_p2 = scmp.ne.s32.totalorder %s1136_s2, %s919_s22  ;;  %p923_p3 = scmp.lt.u32.totalorder %s919_s22, %s1136_s2 }
  0x27   :  { %p925_p4 = pnand %p923_p3, %p920_p2 }
  0x29   :  { %928 = shalt.err (!%p925_p4)
}
  0x2a   :  { %s929_s27 = scalar_lea.vmem %s42_s10, 128  ;;  %p934_p6 = scmp.lt.s32.totalorder %s42_s10, %s42_s10 }
  0x2b   :  { %p930_p5 = scmp.ne.s32.totalorder %s42_s10, %s929_s27  ;;  %p935_p7 = scmp.lt.s32.totalorder %s929_s27, %s929_s27 }
  0x2d   :  { %p936_p8 = por %p935_p7, %p934_p6 }
  0x2f   :  { %p937_p9 = pnand %p936_p8, %p930_p5 }
  0x31   :  { %940 = shalt.err (!%p937_p9)
}
  0x32   :  { %44 = dma.hbm_to_vmem [thread:$0]  %s1136_s2, 128, %s42_s10, [#allocation6]  }
  0x33   :  { %963 = dma.done.wait [#allocation3], 64  }
  0x34   :  { %964 = vsyncadd [#allocation3], 4294967232 }
  0x35   :  { %965 = dma.done.wait [#allocation6], 8320  }
  0x36   :  { %966 = vsyncadd [#allocation6], 4294958976  ;;  %v974_v0 = vmov 0   ;;  %v62_v1 = vld [vmem:[#allocation5] sm:$0xff]  ;;  %v258_v3 = vld [vmem:[#allocation5 + $0x8] sm:$0xff] }
  0x37   :  { %202 = vmatprep.mubr.bf16.mxu0 %v974_v0  ;;  %398 = vmatprep.mubr.bf16.mxu1 %v974_v0  ;;  %v63_v2 = vld [vmem:[#allocation5 + $0x20] sm:$0xff]  ;;  %v259_v6 = vld [vmem:[#allocation5 + $0x28] sm:$0xff]  ;;  %v432_v63 = vld [vmem:[#allocation5 + $0x10] sm:$0xff] }
  0x38   :  { %v797_v4 = vcombine.high %v62_v1, %v63_v2  ;;  %v796_v5 = vcombine.low %v62_v1, %v63_v2  ;;  %v64_v7 = vld [vmem:[#allocation5 + $0x40] sm:$0xff]  ;;  %v813_v9 = vcombine.high %v258_v3, %v259_v6  ;;  %v812_v10 = vcombine.low %v258_v3, %v259_v6  ;;  %v260_v12 = vld [vmem:[#allocation5 + $0x48] sm:$0xff]  ;;  %v433_v1 = vld [vmem:[#allocation5 + $0x30] sm:$0xff] }
  0x39   :  { %v65_v8 = vld [vmem:[#allocation5 + $0x60] sm:$0xff]  ;;  %v261_v13 = vld [vmem:[#allocation5 + $0x68] sm:$0xff]  ;;  %v606_v2 = vld [vmem:[#allocation5 + $0x18] sm:$0xff]  ;;  %v829_v6 = vcombine.high %v432_v63, %v433_v1 }
  0x3a   :  { %v799_v11 = vcombine.high %v64_v7, %v65_v8  ;;  %v66_v14 = vld [vmem:[#allocation5 + $0x80] sm:$0xff]  ;;  %170 = vmatprep.subr.bf16.mxu0 %v797_v4  ;;  %v815_v15 = vcombine.high %v260_v12, %v261_v13  ;;  %v262_v17 = vld [vmem:[#allocation5 + $0x88] sm:$0xff]  ;;  %366 = vmatprep.subr.bf16.mxu1 %v813_v9  ;;  %v798_v19 = vcombine.low %v64_v7, %v65_v8  ;;  %v607_v3 = vld [vmem:[#allocation5 + $0x38] sm:$0xff] }
  0x3b   :  { %v67_v16 = vld [vmem:[#allocation5 + $0xa0] sm:$0xff]  ;;  %v263_v18 = vld [vmem:[#allocation5 + $0xa8] sm:$0xff]  ;;  %171 = vmatpush1.bf16.msra.mxu0 %v796_v5  ;;  %367 = vmatpush1.bf16.msra.mxu1 %v812_v10  ;;  %v814_v20 = vcombine.low %v260_v12, %v261_v13  ;;  %v845_v7 = vcombine.high %v606_v2, %v607_v3  ;;  %v434_v8 = vld [vmem:[#allocation5 + $0x50] sm:$0xff]  ;;  %v828_v13 = vcombine.low %v432_v63, %v433_v1 }
  0x3c   :  { %172 = vmatprep.subr.bf16.mxu0 %v799_v11  ;;  %v801_v21 = vcombine.high %v66_v14, %v67_v16  ;;  %368 = vmatprep.subr.bf16.mxu1 %v815_v15  ;;  %v817_v22 = vcombine.high %v262_v17, %v263_v18  ;;  %v68_v23 = vld [vmem:[#allocation5 + $0xc0] sm:$0xff]  ;;  %v264_v25 = vld [vmem:[#allocation5 + $0xc8] sm:$0xff]  ;;  %v800_v27 = vcombine.low %v66_v14, %v67_v16  ;;  %v435_v9 = vld [vmem:[#allocation5 + $0x70] sm:$0xff] }
  0x3d   :  { %v69_v24 = vld [vmem:[#allocation5 + $0xe0] sm:$0xff]  ;;  %v265_v26 = vld [vmem:[#allocation5 + $0xe8] sm:$0xff]  ;;  %v816_v28 = vcombine.low %v262_v17, %v263_v18  ;;  %v608_v10 = vld [vmem:[#allocation5 + $0x58] sm:$0xff]  ;;  %v844_v14 = vcombine.low %v606_v2, %v607_v3  ;;  %v831_v15 = vcombine.high %v434_v8, %v435_v9  ;;  %v80_v3 = vlaneseq }
  0x3e   :  { %v803_v29 = vcombine.high %v68_v23, %v69_v24  ;;  %v819_v30 = vcombine.high %v264_v25, %v265_v26  ;;  %v70_v31 = vld [vmem:[#allocation5 + $0x100] sm:$0xff]  ;;  %v266_v33 = vld [vmem:[#allocation5 + $0x108] sm:$0xff]  ;;  %v802_v35 = vcombine.low %v68_v23, %v69_v24  ;;  %v818_v36 = vcombine.low %v264_v25, %v265_v26  ;;  %v609_v11 = vld [vmem:[#allocation5 + $0x78] sm:$0xff] }
  0x3f   :  { %173 = vmatpush1.bf16.msra.mxu0 %v798_v19  ;;  %369 = vmatpush1.bf16.msra.mxu1 %v814_v20  ;;  %v71_v32 = vld [vmem:[#allocation5 + $0x120] sm:$0xff]  ;;  %v267_v34 = vld [vmem:[#allocation5 + $0x128] sm:$0xff]  ;;  %v1044_v12 = vld [vmem:[#allocation2] sm:$0xf]  ;;  %v847_v16 = vcombine.high %v608_v10, %v609_v11 }
  0x40   :  { %174 = vmatprep.subr.bf16.mxu0 %v801_v21  ;;  %370 = vmatprep.subr.bf16.mxu1 %v817_v22  ;;  %v805_v37 = vcombine.high %v70_v31, %v71_v32  ;;  %v821_v38 = vcombine.high %v266_v33, %v267_v34  ;;  %v72_v39 = vld [vmem:[#allocation5 + $0x140] sm:$0xff]  ;;  %v268_v41 = vld [vmem:[#allocation5 + $0x148] sm:$0xff]  ;;  %v804_v43 = vcombine.low %v70_v31, %v71_v32  ;;  %v436_v17 = vld [vmem:[#allocation5 + $0x90] sm:$0xff] }
  0x41   :  { %v73_v40 = vld [vmem:[#allocation5 + $0x160] sm:$0xff]  ;;  %v269_v42 = vld [vmem:[#allocation5 + $0x168] sm:$0xff]  ;;  %v820_v44 = vcombine.low %v266_v33, %v267_v34  ;;  %v437_v18 = vld [vmem:[#allocation5 + $0xb0] sm:$0xff]  ;;  %v830_v21 = vcombine.low %v434_v8, %v435_v9  ;;  %v846_v22 = vcombine.low %v608_v10, %v609_v11 }
  0x42   :  { %v807_v45 = vcombine.high %v72_v39, %v73_v40  ;;  %v823_v46 = vcombine.high %v268_v41, %v269_v42  ;;  %v74_v47 = vld [vmem:[#allocation5 + $0x180] sm:$0xff]  ;;  %v270_v49 = vld [vmem:[#allocation5 + $0x188] sm:$0xff]  ;;  %v806_v51 = vcombine.low %v72_v39, %v73_v40  ;;  %v822_v52 = vcombine.low %v268_v41, %v269_v42  ;;  %v610_v19 = vld [vmem:[#allocation5 + $0x98] sm:$0xff] }
  0x43   :  { %175 = vmatpush1.bf16.msra.mxu0 %v800_v27  ;;  %371 = vmatpush1.bf16.msra.mxu1 %v816_v28  ;;  %v75_v48 = vld [vmem:[#allocation5 + $0x1a0] sm:$0xff]  ;;  %v271_v50 = vld [vmem:[#allocation5 + $0x1a8] sm:$0xff]  ;;  %v611_v20 = vld [vmem:[#allocation5 + $0xb8] sm:$0xff]  ;;  %v833_v23 = vcombine.high %v436_v17, %v437_v18 }
  0x44   :  { %176 = vmatprep.subr.bf16.mxu0 %v803_v29  ;;  %372 = vmatprep.subr.bf16.mxu1 %v819_v30  ;;  %v809_v53 = vcombine.high %v74_v47, %v75_v48  ;;  %v825_v54 = vcombine.high %v270_v49, %v271_v50  ;;  %v76_v55 = vld [vmem:[#allocation5 + $0x1c0] sm:$0xff]  ;;  %v272_v57 = vld [vmem:[#allocation5 + $0x1c8] sm:$0xff]  ;;  %v808_v59 = vcombine.low %v74_v47, %v75_v48  ;;  %v438_v25 = vld [vmem:[#allocation5 + $0xd0] sm:$0xff] }
  0x45   :  { %v77_v56 = vld [vmem:[#allocation5 + $0x1e0] sm:$0xff]  ;;  %v273_v58 = vld [vmem:[#allocation5 + $0x1e8] sm:$0xff]  ;;  %v824_v60 = vcombine.low %v270_v49, %v271_v50  ;;  %v849_v24 = vcombine.high %v610_v19, %v611_v20  ;;  %v439_v26 = vld [vmem:[#allocation5 + $0xf0] sm:$0xff]  ;;  %v832_v29 = vcombine.low %v436_v17, %v437_v18  ;;  %v848_v30 = vcombine.low %v610_v19, %v611_v20 }
  0x46   :  { %v811_v61 = vcombine.high %v76_v55, %v77_v56  ;;  %v827_v62 = vcombine.high %v272_v57, %v273_v58  ;;  %v810_v4 = vcombine.low %v76_v55, %v77_v56  ;;  %v826_v5 = vcombine.low %v272_v57, %v273_v58  ;;  %v612_v27 = vld [vmem:[#allocation5 + $0xd8] sm:$0xff]  ;;  %v440_v33 = vld [vmem:[#allocation5 + $0x110] sm:$0xff]  ;;  %v274_v8 = vld [vmem:[#allocation7 + $0x2] sm:$0x3] }
  0x47   :  { %177 = vmatpush1.bf16.msra.mxu0 %v802_v35  ;;  %373 = vmatpush1.bf16.msra.mxu1 %v818_v36  ;;  %v613_v28 = vld [vmem:[#allocation5 + $0xf8] sm:$0xff]  ;;  %v835_v31 = vcombine.high %v438_v25, %v439_v26  ;;  %v441_v34 = vld [vmem:[#allocation5 + $0x130] sm:$0xff] }
  0x48   :  { %178 = vmatprep.subr.bf16.mxu0 %v805_v37  ;;  %374 = vmatprep.subr.bf16.mxu1 %v821_v38  ;;  %v851_v32 = vcombine.high %v612_v27, %v613_v28  ;;  %v614_v35 = vld [vmem:[#allocation5 + $0x118] sm:$0xff]  ;;  %v834_v37 = vcombine.low %v438_v25, %v439_v26  ;;  %v850_v38 = vcombine.low %v612_v27, %v613_v28  ;;  %v442_v40 = vld [vmem:[#allocation5 + $0x150] sm:$0xff] }
  0x49   :  { %v615_v36 = vld [vmem:[#allocation5 + $0x138] sm:$0xff]  ;;  %v837_v39 = vcombine.high %v440_v33, %v441_v34  ;;  %v443_v41 = vld [vmem:[#allocation5 + $0x170] sm:$0xff] }
  0x4a   :  { %v616_v42 = vld [vmem:[#allocation5 + $0x158] sm:$0xff]  ;;  %v444_v48 = vld [vmem:[#allocation5 + $0x190] sm:$0xff] }
  0x4b   :  { %179 = vmatpush1.bf16.msra.mxu0 %v804_v43  ;;  %375 = vmatpush1.bf16.msra.mxu1 %v820_v44  ;;  %v617_v43 = vld [vmem:[#allocation5 + $0x178] sm:$0xff]  ;;  %v836_v44 = vcombine.low %v440_v33, %v441_v34  ;;  %v445_v49 = vld [vmem:[#allocation5 + $0x1b0] sm:$0xff]  ;;  %v448_v33 = vld [vmem:[#allocation7 + $0x4] sm:$0x3] }
  0x4c   :  { %180 = vmatprep.subr.bf16.mxu0 %v807_v45  ;;  %376 = vmatprep.subr.bf16.mxu1 %v823_v46  ;;  %v852_v45 = vcombine.low %v614_v35, %v615_v36  ;;  %v839_v46 = vcombine.high %v442_v40, %v443_v41  ;;  %v855_v47 = vcombine.high %v616_v42, %v617_v43  ;;  %v618_v50 = vld [vmem:[#allocation5 + $0x198] sm:$0xff]  ;;  %v446_v56 = vld [vmem:[#allocation5 + $0x1d0] sm:$0xff]  ;;  %v622_v34 = vld [vmem:[#allocation7 + $0x6] sm:$0x3] }
  0x4d   :  { %v447_v57 = vld [vmem:[#allocation5 + $0x1f0] sm:$0xff]  ;;  %v620_v58 = vld [vmem:[#allocation5 + $0x1d8] sm:$0xff] }
  0x4e   :  { %v842_v1 = vcombine.low %v446_v56, %v447_v57 }
  0x4f   :  { %181 = vmatpush1.bf16.msra.mxu0 %v806_v51  ;;  %377 = vmatpush1.bf16.msra.mxu1 %v822_v52  ;;  %v619_v51 = vld [vmem:[#allocation5 + $0x1b8] sm:$0xff]  ;;  %v838_v52 = vcombine.low %v442_v40, %v443_v41 }
  0x50   :  { %182 = vmatprep.subr.bf16.mxu0 %v809_v53  ;;  %378 = vmatprep.subr.bf16.mxu1 %v825_v54  ;;  %v854_v53 = vcombine.low %v616_v42, %v617_v43  ;;  %v841_v54 = vcombine.high %v444_v48, %v445_v49  ;;  %v857_v55 = vcombine.high %v618_v50, %v619_v51 }
  0x53   :  { %183 = vmatpush1.bf16.msra.mxu0 %v808_v59  ;;  %379 = vmatpush1.bf16.msra.mxu1 %v824_v60  ;;  %v621_v59 = vld [vmem:[#allocation5 + $0x1f8] sm:$0xff]  ;;  %v840_v60 = vcombine.low %v444_v48, %v445_v49 }
  0x54   :  { %184 = vmatprep.subr.bf16.mxu0 %v811_v61  ;;  %380 = vmatprep.subr.bf16.mxu1 %v827_v62  ;;  %v856_v61 = vcombine.low %v618_v50, %v619_v51  ;;  %v843_v62 = vcombine.high %v446_v56, %v447_v57  ;;  %v859_v63 = vcombine.high %v620_v58, %v621_v59 }
  0x55   :  { %v858_v2 = vcombine.low %v620_v58, %v621_v59 }
  0x57   :  { %185 = vmatpush1.bf16.msra.mxu0 %v810_v4  ;;  %381 = vmatpush1.bf16.msra.mxu1 %v826_v5  ;;  %v81_v4 = vshrl.u32 %v80_v3, 7 }
  0x58   :  { %540 = vmatprep.subr.bf16.mxu0 %v829_v6  ;;  %714 = vmatprep.subr.bf16.mxu1 %v845_v7  ;;  %v78_v6 = vld [vmem:[#allocation7] sm:$0x3] }
  0x59   :  { %v1052_v5 = vsub.s32 0, %v81_v4  ;;  %v1054_v7 = vsub.s32 1, %v81_v4 }
  0x5a   :  { %203 = vmatmul.mubr.bf16.vlgmr.msra.gmra.mrb[0].mxu0 %v1044_v12  ;;  %399 = vmatmul.mubr.bf16.vlgmr.msra.gmra.mrb[0].mxu1 %v1044_v12 }
  0x5b   :  { %541 = vmatpush1.bf16.msra.mxu0 %v828_v13  ;;  %715 = vmatpush1.bf16.msra.mxu1 %v844_v14  ;;  %v83_v9 = vrot.slane %v78_v6, %v1052_v5  ;;  %v87_v10 = vrot.slane %v78_v6, %v1054_v7  ;;  %v279_v11 = vrot.slane %v274_v8, %v1052_v5 }
  0x5c   :  { %542 = vmatprep.subr.bf16.mxu0 %v831_v15  ;;  %716 = vmatprep.subr.bf16.mxu1 %v847_v16  ;;  %v283_v13 = vrot.slane %v274_v8, %v1054_v7 }
  0x5d   :  { %572 = vmatprep.mubr.bf16.mxu0 %v974_v0  ;;  %746 = vmatprep.mubr.bf16.mxu1 %v974_v0  ;;  %v853_v0 = vcombine.high %v614_v35, %v615_v36  ;;  %v453_v35 = vrot.slane %v448_v33, %v1052_v5  ;;  %v457_v36 = vrot.slane %v448_v33, %v1054_v7 }
  0x5f   :  { %543 = vmatpush1.bf16.msra.mxu0 %v830_v21  ;;  %717 = vmatpush1.bf16.msra.mxu1 %v846_v22 }
  0x60   :  { %544 = vmatprep.subr.bf16.mxu0 %v833_v23  ;;  %718 = vmatprep.subr.bf16.mxu1 %v849_v24 }
  0x63   :  { %545 = vmatpush1.bf16.msra.mxu0 %v832_v29  ;;  %719 = vmatpush1.bf16.msra.mxu1 %v848_v30 }
  0x64   :  { %546 = vmatprep.subr.bf16.mxu0 %v835_v31  ;;  %720 = vmatprep.subr.bf16.mxu1 %v851_v32 }
  0x67   :  { %547 = vmatpush1.bf16.msra.mxu0 %v834_v37  ;;  %721 = vmatpush1.bf16.msra.mxu1 %v850_v38  ;;  %v627_v37 = vrot.slane %v622_v34, %v1052_v5  ;;  %v631_v38 = vrot.slane %v622_v34, %v1054_v7 }
  0x68   :  { %548 = vmatprep.subr.bf16.mxu0 %v837_v39  ;;  %722 = vmatprep.subr.bf16.mxu1 %v853_v0 }
  0x6b   :  { %549 = vmatpush1.bf16.msra.mxu0 %v836_v44  ;;  %723 = vmatpush1.bf16.msra.mxu1 %v852_v45 }
  0x6c   :  { %550 = vmatprep.subr.bf16.mxu0 %v839_v46  ;;  %724 = vmatprep.subr.bf16.mxu1 %v855_v47 }
  0x6f   :  { %551 = vmatpush1.bf16.msra.mxu0 %v838_v52  ;;  %725 = vmatpush1.bf16.msra.mxu1 %v854_v53 }
  0x70   :  { %552 = vmatprep.subr.bf16.mxu0 %v841_v54  ;;  %726 = vmatprep.subr.bf16.mxu1 %v857_v55 }
  0x73   :  { %553 = vmatpush1.bf16.msra.mxu0 %v840_v60  ;;  %727 = vmatpush1.bf16.msra.mxu1 %v856_v61 }
  0x74   :  { %554 = vmatprep.subr.bf16.mxu0 %v843_v62  ;;  %728 = vmatprep.subr.bf16.mxu1 %v859_v63 }
  0x77   :  { %555 = vmatpush1.bf16.msra.mxu0 %v842_v1  ;;  %729 = vmatpush1.bf16.msra.mxu1 %v858_v2 }
  0x7a   :  { %573 = vmatmul.mubr.bf16.vlgmr.msra.gmra.mrb[4].mxu0 %v1044_v12  ;;  %747 = vmatmul.mubr.bf16.vlgmr.msra.gmra.mrb[4].mxu1 %v1044_v12 }
 0x12d   :  { %v204_v14 = vpop.f32.mrb[0].mxu0  ;;  %v400_v16 = vpop.f32.mrb[0].mxu1 }
 0x12e   :  { %v1060_v15 = vadd.f32 %v204_v14, %v83_v9  ;;  %v206_v12 = vpop.f32.mrb[1].mxu0  ;;  %v1064_v19 = vadd.f32 %v400_v16, %v279_v11  ;;  %v402_v20 = vpop.f32.mrb[1].mxu1  ;;  %v60_v14 = vld [vmem:[%s1137_s3] sm:$0x3]  ;;  %s975_s3 = smov [#allocation8]  }
 0x12f   :  { %v1062_v17 = vadd.f32 %v206_v12, %v87_v10  ;;  %v208_v18 = vpop.f32.mrb[2].mxu0  ;;  %v1066_v22 = vadd.f32 %v402_v20, %v283_v13  ;;  %v404_v23 = vpop.f32.mrb[2].mxu1  ;;  %v61_v12 = vld [vmem:[%s1138_s4] sm:$0x3]  ;;  %v234_v20 = vrot.slane %v60_v14, %v1052_v5  ;;  %s786_s4 = sshll.u32 %s975_s3, 4  ;;  %s787_s4 = int_to_ptr.vmem [resolvable:$true] %s786_s4 }
 0x130   :  { %v209_v21 = vpop.f32.mrb[3].mxu0  ;;  %v405_v24 = vpop.f32.mrb[3].mxu1  ;;  %v410_v26 = vmul.f32 %v1064_v19, %v1064_v19  ;;  %v214_v30 = vmul.f32 %v1060_v15, %v1060_v15  ;;  %s941_s7 = scalar_lea.vmem %s787_s4, 1024  ;;  %p946_p11 = scmp.lt.s32.totalorder %s787_s4, %s787_s4 }
 0x131   :  { %v211_v25 = vadd.f32 %v1062_v17, %v1060_v15  ;;  %v411_v27 = vmul.f32 %v1066_v22, %v1066_v22  ;;  %v407_v28 = vadd.f32 %v1066_v22, %v1064_v19  ;;  %v215_v31 = vmul.f32 %v1062_v17, %v1062_v17  ;;  %p942_p10 = scmp.ne.s32.totalorder %s787_s4, %s941_s7  ;;  %p947_p12 = scmp.lt.s32.totalorder %s941_s7, %s941_s7 }
 0x132   :  { %v238_v21 = vrot.slane %v60_v14, %v1054_v7  ;;  %v247_v24 = vrot.slane %v61_v12, %v1052_v5 }
 0x133   :  { %212 = vadd.xlane.f32.xlu0 %v211_v25  ;;  %v412_v29 = vadd.f32 %v411_v27, %v410_v26  ;;  %v216_v32 = vadd.f32 %v215_v31, %v214_v30  ;;  %v251_v25 = vrot.slane %v61_v12, %v1054_v7  ;;  %p948_p13 = por %p947_p12, %p946_p11 }
 0x135   :  { %413 = vadd.xlane.f32.xlu1 %v412_v29  ;;  %p949_p0 = pnand %p948_p13, %p942_p10 }
 0x137   :  { %408 = vadd.xlane.f32.xlu0 %v407_v28 }
 0x13b   :  { %217 = vadd.xlane.f32.xlu0 %v216_v32 }
 0x14d   :  { %v574_v39 = vpop.f32.mrb[4].mxu0  ;;  %v748_v41 = vpop.f32.mrb[4].mxu1 }
 0x14e   :  { %v1084_v0 = vadd.f32 %v574_v39, %v453_v35  ;;  %v576_v40 = vpop.f32.mrb[5].mxu0  ;;  %v1088_v43 = vadd.f32 %v748_v41, %v627_v37  ;;  %v750_v45 = vpop.f32.mrb[5].mxu1 }
 0x14f   :  { %v1086_v42 = vadd.f32 %v576_v40, %v457_v36  ;;  %v578_v44 = vpop.f32.mrb[6].mxu0  ;;  %v1090_v46 = vadd.f32 %v750_v45, %v631_v38  ;;  %v752_v48 = vpop.f32.mrb[6].mxu1 }
 0x150   :  { %v579_v47 = vpop.f32.mrb[7].mxu0  ;;  %v584_v49 = vmul.f32 %v1084_v0, %v1084_v0  ;;  %v753_v50 = vpop.f32.mrb[7].mxu1  ;;  %v758_v55 = vmul.f32 %v1088_v43, %v1088_v43 }
 0x151   :  { %v581_v51 = vadd.f32 %v1086_v42, %v1084_v0  ;;  %v585_v52 = vmul.f32 %v1086_v42, %v1086_v42  ;;  %v755_v54 = vadd.f32 %v1090_v46, %v1088_v43  ;;  %v759_v56 = vmul.f32 %v1090_v46, %v1090_v46 }
 0x153   :  { %582 = vadd.xlane.f32.xlu1 %v581_v51  ;;  %v586_v53 = vadd.f32 %v585_v52, %v584_v49  ;;  %v760_v57 = vadd.f32 %v759_v56, %v758_v55 }
 0x155   :  { %587 = vadd.xlane.f32.xlu0 %v586_v53 }
 0x157   :  { %756 = vadd.xlane.f32.xlu1 %v755_v54 }
 0x15b   :  { %761 = vadd.xlane.f32.xlu1 %v760_v57 }
 0x1c0   :  { %v213_v58 = vpop.xlane.xlu0 %212 }
 0x1c1   :  { %v219_v61 = vmul.f32 0.00390625, %v213_v58 }
 0x1c2   :  { %v414_v59 = vpop.xlane.xlu1 %413 }
 0x1c3   :  { %v416_v63 = vmul.f32 0.00390625, %v414_v59  ;;  %v221_v4 = vmul.f32 %v219_v61, %v219_v61  ;;  %v224_v26 = vsub.f32 %v1060_v15, %v219_v61  ;;  %v225_v27 = vsub.f32 %v1062_v17, %v219_v61 }
 0x1c4   :  { %v409_v60 = vpop.xlane.xlu0 %408 }
 0x1c5   :  { %v415_v62 = vmul.f32 0.00390625, %v409_v60 }
 0x1c7   :  { %v417_v1 = vmul.f32 %v415_v62, %v415_v62  ;;  %v420_v16 = vsub.f32 %v1064_v19, %v415_v62  ;;  %v421_v18 = vsub.f32 %v1066_v22, %v415_v62 }
 0x1c8   :  { %v218_v2 = vpop.xlane.xlu0 %217 }
 0x1c9   :  { %v418_v3 = vsub.f32 %v416_v63, %v417_v1  ;;  %v220_v6 = vmul.f32 0.00390625, %v218_v2 }
 0x1cb   :  { %v419_v8 = vmax.f32 %v418_v3, 0.0  ;;  %v222_v9 = vsub.f32 %v220_v6, %v221_v4 }
 0x1cd   :  { %v422_v10 = vadd.f32 1e-05, %v419_v8  ;;  %v223_v11 = vmax.f32 %v222_v9, 0.0 }
 0x1cf   :  { %867 = vrsqrt.f32 %v422_v10  ;;  %v226_v13 = vadd.f32 1e-05, %v223_v11 }
 0x1d1   :  { %869 = vrsqrt.f32 %v226_v13 }
 0x1d9   :  { %v868_v23 = vpop.eup %867 }
 0x1da   :  { %v424_v28 = vmul.f32 %v868_v23, %v420_v16  ;;  %v425_v29 = vmul.f32 %v868_v23, %v421_v18 }
 0x1db   :  { %v870_v30 = vpop.eup %869 }
 0x1dc   :  { %v426_v31 = vmul.f32 %v424_v28, %v234_v20  ;;  %v427_v19 = vmul.f32 %v425_v29, %v238_v21  ;;  %v228_v32 = vmul.f32 %v870_v30, %v224_v26  ;;  %v229_v22 = vmul.f32 %v870_v30, %v225_v27 }
 0x1de   :  { %v428_v33 = vadd.f32 %v426_v31, %v247_v24  ;;  %v429_v34 = vadd.f32 %v427_v19, %v251_v25  ;;  %v241_v35 = vmul.f32 %v234_v20, %v228_v32  ;;  %v242_v36 = vmul.f32 %v238_v21, %v229_v22 }
 0x1e0   :  { %430 = vst [vmem:[#allocation8 + $0x10] sm:$0xff] %v428_v33  ;;  %431 = vst [vmem:[#allocation8 + $0x18] sm:$0xff] %v429_v34  ;;  %v254_v5 = vadd.f32 %v247_v24, %v241_v35  ;;  %v255_v37 = vadd.f32 %v251_v25, %v242_v36  ;;  %v583_v7 = vpop.xlane.xlu1 %582 }
 0x1e1   :  { %v589_v38 = vmul.f32 0.00390625, %v583_v7 }
 0x1e2   :  { %256 = vst [vmem:[#allocation8] sm:$0xff] %v254_v5  ;;  %257 = vst [vmem:[#allocation8 + $0x8] sm:$0xff] %v255_v37  ;;  %v588_v15 = vpop.xlane.xlu0 %587 }
 0x1e3   :  { %v591_v17 = vmul.f32 %v589_v38, %v589_v38  ;;  %v590_v39 = vmul.f32 0.00390625, %v588_v15  ;;  %v594_v54 = vsub.f32 %v1084_v0, %v589_v38  ;;  %v595_v55 = vsub.f32 %v1086_v42, %v589_v38 }
 0x1e4   :  { %v757_v40 = vpop.xlane.xlu1 %756 }
 0x1e5   :  { %v592_v41 = vsub.f32 %v590_v39, %v591_v17  ;;  %v763_v44 = vmul.f32 0.00390625, %v757_v40 }
 0x1e7   :  { %v593_v45 = vmax.f32 %v592_v41, 0.0  ;;  %v765_v49 = vmul.f32 %v763_v44, %v763_v44  ;;  %v768_v63 = vsub.f32 %v1088_v43, %v763_v44  ;;  %v769_v1 = vsub.f32 %v1090_v46, %v763_v44 }
 0x1e8   :  { %v762_v47 = vpop.xlane.xlu1 %761 }
 0x1e9   :  { %v596_v48 = vadd.f32 1e-05, %v593_v45  ;;  %v764_v50 = vmul.f32 0.00390625, %v762_v47 }
 0x1eb   :  { %871 = vrsqrt.f32 %v596_v48  ;;  %v766_v51 = vsub.f32 %v764_v50, %v765_v49 }
 0x1ed   :  { %v767_v52 = vmax.f32 %v766_v51, 0.0 }
 0x1ef   :  { %v770_v53 = vadd.f32 1e-05, %v767_v52 }
 0x1f1   :  { %873 = vrsqrt.f32 %v770_v53 }
 0x1f5   :  { %v872_v56 = vpop.eup %871 }
 0x1f6   :  { %v598_v57 = vmul.f32 %v872_v56, %v594_v54  ;;  %v599_v58 = vmul.f32 %v872_v56, %v595_v55 }
 0x1f8   :  { %v600_v59 = vmul.f32 %v598_v57, %v234_v20  ;;  %v601_v60 = vmul.f32 %v599_v58, %v238_v21 }
 0x1fa   :  { %v602_v61 = vadd.f32 %v600_v59, %v247_v24  ;;  %v603_v62 = vadd.f32 %v601_v60, %v251_v25 }
 0x1fb   :  { %v874_v2 = vpop.eup %873 }
 0x1fc   :  { %604 = vst [vmem:[#allocation8 + $0x20] sm:$0xff] %v602_v61  ;;  %605 = vst [vmem:[#allocation8 + $0x28] sm:$0xff] %v603_v62  ;;  %v772_v3 = vmul.f32 %v874_v2, %v768_v63  ;;  %v773_v4 = vmul.f32 %v874_v2, %v769_v1 }
 0x1fe   :  { %v774_v0 = vmul.f32 %v772_v3, %v234_v20  ;;  %v775_v42 = vmul.f32 %v773_v4, %v238_v21 }
 0x200   :  { %v776_v6 = vadd.f32 %v774_v0, %v247_v24  ;;  %v777_v8 = vadd.f32 %v775_v42, %v251_v25 }
 0x202   :  { %778 = vst [vmem:[#allocation8 + $0x30] sm:$0xff] %v776_v6  ;;  %779 = vst [vmem:[#allocation8 + $0x38] sm:$0xff] %v777_v8 }
 0x203   :  { %952 = shalt.err (!%p949_p0)
}
 0x204   :  { %s953_s10 = scalar_lea.hbm %s1139_s5, 1024 }
 0x205   :  { %p954_p1 = scmp.ne.s32.totalorder %s1139_s5, %s953_s10  ;;  %p957_p2 = scmp.lt.u32.totalorder %s953_s10, %s1139_s5 }
 0x207   :  { %p959_p3 = pnand %p957_p2, %p954_p1 }
 0x209   :  { %962 = shalt.err (!%p959_p3)
}
 0x20a   :  { %789 = dma.vmem_to_hbm [thread:$0]  %s787_s4, 1024, %s1139_s5, [#allocation4]  }
 0x20b   :  { %967 = dma.done.wait [#allocation4], 1024  }
 0x20c   :  { %968 = vsyncadd [#allocation4], 4294966272 }
 0x20d   :  { %793 = vsyncpa [#allocation3], 1 }
 0x20e   :  { %794 = vsyncpa [#allocation6], 1 }
 0x20f   :  { %795 = vsyncpa [#allocation4], 1 }

</bundles_post_ra>
